<compile_context>
chip_gen: v7x
topology: tpu7x:2x2x1
jax: 0.10.0
libtpu: 0.0.40
codegen_flags: <defaults>
</compile_context>

<pallas_src>
import jax
import jax.numpy as jnp
from jax.experimental import pallas as pl
from jax.experimental.pallas import tpu as pltpu

MIN_LOGSTD = -20.0
MAX_LOGSTD = 2.0

_TILE_B_MAX = 2048  # rows per grid step; packed (2048,128) f32 out block = 1 MiB (x2 buffers)


def _round_up(x, m):
    return ((x + m - 1) // m) * m


def _policy_kernel(x_ref, w1_ref, b1_ref, w2_ref, b2_ref, wmu_ref, bmu_ref, out_ref):
    # Encoder: two Linear + ReLU layers, all f32 (exact parity with the PyTorch module).
    x = x_ref[...]                                                        # (tile_b, obs) f32
    h = jnp.dot(x, w1_ref[...], preferred_element_type=jnp.float32) + b1_ref[...]
    h = jnp.maximum(h, 0.0)
    h = jnp.dot(h, w2_ref[...], preferred_element_type=jnp.float32) + b2_ref[...]
    h = jnp.maximum(h, 0.0)

    # mu head (dense stand-in for the equivariant linear), padded to half the packed width.
    mu = jnp.dot(h, wmu_ref[...], preferred_element_type=jnp.float32) + bmu_ref[...]

    # Pack mu | tanh(mu) into one lane-dense block -> single unmasked 128-lane store.
    out_ref[...] = jnp.concatenate([mu, jnp.tanh(mu)], axis=-1)


@jax.jit
def equivariant_normal_policy(x, w1, b1, w2, b2, wmu, bmu, logstd_param):
    batch, obs_dim = x.shape
    hidden = w1.shape[1]
    action_size = wmu.shape[1]

    # Packed output layout: mu in lanes [0, half), tanh(mu) in lanes [half, 2*half).
    half = max(64, _round_up(action_size, 64))
    packed_w = 2 * half                      # multiple of 128 -> lane-dense, unmasked stores

    # Batch tiling: always an even number of grid steps (v7x: both TCs share the "parallel"
    # batch axis), tiles capped at _TILE_B_MAX rows, rows a multiple of 8 (f32 sublane tile).
    b_aligned = _round_up(batch, 16)
    n_steps = 2 * pl.cdiv(b_aligned, 2 * _TILE_B_MAX)
    tile_b = _round_up(pl.cdiv(b_aligned, n_steps), 8)
    batch_pad = n_steps * tile_b
    grid = (n_steps,)

    # Wrapper-side layout prep (all f32; skip the pad pass over x when already aligned).
    pad_rows = batch_pad - batch
    x_p = x if pad_rows == 0 else jnp.pad(x, ((0, pad_rows), (0, 0)))
    wmu_p = jnp.pad(wmu, ((0, 0), (0, half - action_size)))
    bmu_p = jnp.pad(bmu, ((0, 0), (0, half - action_size)))

    flops = 2 * batch_pad * (obs_dim * hidden + hidden * hidden + hidden * half)
    bytes_accessed = 4 * (x_p.size + w1.size + b1.size + w2.size + b2.size
                          + wmu_p.size + bmu_p.size + batch_pad * packed_w)
    cost = pl.CostEstimate(flops=flops, transcendentals=batch_pad * half,
                           bytes_accessed=bytes_accessed)

    const = lambda i: (0, 0)  # weights/biases: DMA'd once, VMEM-resident across the grid
    packed = pl.pallas_call(
        _policy_kernel,
        out_shape=jax.ShapeDtypeStruct((batch_pad, packed_w), jnp.float32),
        grid=grid,
        in_specs=[
            pl.BlockSpec((tile_b, obs_dim), lambda i: (i, 0)),
            pl.BlockSpec((obs_dim, hidden), const),
            pl.BlockSpec((1, hidden), const),
            pl.BlockSpec((hidden, hidden), const),
            pl.BlockSpec((1, hidden), const),
            pl.BlockSpec((hidden, half), const),
            pl.BlockSpec((1, half), const),
        ],
        out_specs=pl.BlockSpec((tile_b, packed_w), lambda i: (i, 0)),
        compiler_params=pltpu.CompilerParams(dimension_semantics=("parallel",)),
        cost_estimate=cost,
    )(x_p, w1, b1, w2, b2, wmu_p, bmu_p)

    # Narrow (action_size-wide) views out of the single packed array — no full-width re-read.
    mu = packed[:batch, :action_size]
    squashed_mu = packed[:batch, half:half + action_size]

    # use_std_parameter=True path, batch-independent -> plain JAX (hoisted out of the kernel).
    # Shape stays (1, action_size), matching the PyTorch parameter (unexpanded).
    clipped_logstd = MIN_LOGSTD + jax.nn.sigmoid(logstd_param) * (MAX_LOGSTD - MIN_LOGSTD)
    return mu, squashed_mu, clipped_logstd


def _reference(x, w1, b1, w2, b2, wmu, bmu, logstd_param):
    # Pure f32 reference (HIGHEST precision so XLA does not silently drop to bf16 matmuls).
    hi = jax.lax.Precision.HIGHEST
    h = jnp.maximum(jnp.dot(x, w1, precision=hi) + b1, 0.0)
    h = jnp.maximum(jnp.dot(h, w2, precision=hi) + b2, 0.0)
    mu = jnp.dot(h, wmu, precision=hi) + bmu
    clipped = MIN_LOGSTD + jax.nn.sigmoid(logstd_param) * (MAX_LOGSTD - MIN_LOGSTD)
    return mu, jnp.tanh(mu), clipped


if __name__ == "__main__":
    key = jax.random.PRNGKey(0)
    batch = 2
    obs_dim = 32
    hidden = 32
    action_size = 9  # Trifinger: 3 fingers x 3 joints

    ks = jax.random.split(key, 8)
    x = jax.random.normal(ks[0], (batch, obs_dim), dtype=jnp.float32)
    w1 = 0.1 * jax.random.normal(ks[1], (obs_dim, hidden), dtype=jnp.float32)
    b1 = 0.01 * jax.random.normal(ks[2], (1, hidden), dtype=jnp.float32)
    w2 = 0.1 * jax.random.normal(ks[3], (hidden, hidden), dtype=jnp.float32)
    b2 = 0.01 * jax.random.normal(ks[4], (1, hidden), dtype=jnp.float32)
    wmu = 0.1 * jax.random.normal(ks[5], (hidden, action_size), dtype=jnp.float32)
    bmu = 0.01 * jax.random.normal(ks[6], (1, action_size), dtype=jnp.float32)
    logstd_param = jnp.zeros((1, action_size), dtype=jnp.float32)

    mu, squashed_mu, clipped_logstd = equivariant_normal_policy(
        x, w1, b1, w2, b2, wmu, bmu, logstd_param)
    jax.block_until_ready((mu, squashed_mu, clipped_logstd))

    ref_mu, ref_sq, ref_cl = _reference(x, w1, b1, w2, b2, wmu, bmu, logstd_param)
    assert mu.shape == (batch, action_size)
    assert squashed_mu.shape == (batch, action_size)
    assert clipped_logstd.shape == (1, action_size)
    # Tolerance covers MXU f32 multi-pass rounding vs XLA's HIGHEST-precision f32 reference.
    assert jnp.allclose(mu, ref_mu, atol=2e-3, rtol=2e-3)
    assert jnp.allclose(squashed_mu, ref_sq, atol=2e-3, rtol=2e-3)
    assert jnp.allclose(clipped_logstd, ref_cl, atol=1e-6)

    print("KERNEL_OK")
</pallas_src>

<mosaic_0001>
module attributes {stable_mosaic.version = 11 : i64} {
  func.func @_policy_kernel(%arg0: i32, %arg1: memref<8x32xf32, #tpu.memory_space<vmem>>, %arg2: memref<32x32xf32, #tpu.memory_space<vmem>>, %arg3: memref<1x32xf32, #tpu.memory_space<vmem>>, %arg4: memref<32x32xf32, #tpu.memory_space<vmem>>, %arg5: memref<1x32xf32, #tpu.memory_space<vmem>>, %arg6: memref<32x64xf32, #tpu.memory_space<vmem>>, %arg7: memref<1x64xf32, #tpu.memory_space<vmem>>, %arg8: memref<8x128xf32, #tpu.memory_space<vmem>>) attributes {dimension_semantics = [#tpu.dimension_semantics<parallel>], iteration_bounds = array<i64: 2>, scalar_prefetch = 0 : i64, scratch_operands = 0 : i64, tpu.core_type = #tpu.core_type<tc>, window_params = [{transform_indices = @transform_0, window_bounds = array<i64: 8, 32>}, {pipeline_mode = #tpu.pipeline_mode<synchronous>, transform_indices = @transform_1, window_bounds = array<i64: 32, 32>}, {pipeline_mode = #tpu.pipeline_mode<synchronous>, transform_indices = @transform_2, window_bounds = array<i64: 1, 32>}, {pipeline_mode = #tpu.pipeline_mode<synchronous>, transform_indices = @transform_3, window_bounds = array<i64: 32, 32>}, {pipeline_mode = #tpu.pipeline_mode<synchronous>, transform_indices = @transform_4, window_bounds = array<i64: 1, 32>}, {pipeline_mode = #tpu.pipeline_mode<synchronous>, transform_indices = @transform_5, window_bounds = array<i64: 32, 64>}, {pipeline_mode = #tpu.pipeline_mode<synchronous>, transform_indices = @transform_6, window_bounds = array<i64: 1, 64>}, {transform_indices = @transform_7, window_bounds = array<i64: 8, 128>}]} {
    %c0 = arith.constant 0 : index
    %c0_0 = arith.constant 0 : index
    %0 = vector.load %arg1[%c0, %c0_0] : memref<8x32xf32, #tpu.memory_space<vmem>>, vector<8x32xf32>
    %c0_1 = arith.constant 0 : index
    %c0_2 = arith.constant 0 : index
    %1 = vector.load %arg2[%c0_1, %c0_2] : memref<32x32xf32, #tpu.memory_space<vmem>>, vector<32x32xf32>
    %cst = arith.constant dense<0.000000e+00> : vector<8x32xf32>
    %2 = tpu.matmul %0, %1, %cst {dimension_numbers = #tpu.dot_dimension_numbers<[1], [0], [0], [1], [0, 0, 1, 1], [], []>} : vector<8x32xf32>, vector<32x32xf32>, vector<8x32xf32> -> vector<8x32xf32>
    %c0_3 = arith.constant 0 : index
    %c0_4 = arith.constant 0 : index
    %3 = vector.load %arg3[%c0_3, %c0_4] : memref<1x32xf32, #tpu.memory_space<vmem>>, vector<1x32xf32>
    %4 = vector.broadcast %3 : vector<1x32xf32> to vector<8x32xf32>
    %5 = arith.addf %2, %4 : vector<8x32xf32>
    %cst_5 = arith.constant 0.000000e+00 : f32
    %6 = vector.broadcast %cst_5 : f32 to vector<8x32xf32>
    %7 = arith.maximumf %5, %6 : vector<8x32xf32>
    %c0_6 = arith.constant 0 : index
    %c0_7 = arith.constant 0 : index
    %8 = vector.load %arg4[%c0_6, %c0_7] : memref<32x32xf32, #tpu.memory_space<vmem>>, vector<32x32xf32>
    %cst_8 = arith.constant dense<0.000000e+00> : vector<8x32xf32>
    %9 = tpu.matmul %7, %8, %cst_8 {dimension_numbers = #tpu.dot_dimension_numbers<[1], [0], [0], [1], [0, 0, 1, 1], [], []>} : vector<8x32xf32>, vector<32x32xf32>, vector<8x32xf32> -> vector<8x32xf32>
    %c0_9 = arith.constant 0 : index
    %c0_10 = arith.constant 0 : index
    %10 = vector.load %arg5[%c0_9, %c0_10] : memref<1x32xf32, #tpu.memory_space<vmem>>, vector<1x32xf32>
    %11 = vector.broadcast %10 : vector<1x32xf32> to vector<8x32xf32>
    %12 = arith.addf %9, %11 : vector<8x32xf32>
    %cst_11 = arith.constant 0.000000e+00 : f32
    %13 = vector.broadcast %cst_11 : f32 to vector<8x32xf32>
    %14 = arith.maximumf %12, %13 : vector<8x32xf32>
    %c0_12 = arith.constant 0 : index
    %c0_13 = arith.constant 0 : index
    %15 = vector.load %arg6[%c0_12, %c0_13] : memref<32x64xf32, #tpu.memory_space<vmem>>, vector<32x64xf32>
    %cst_14 = arith.constant dense<0.000000e+00> : vector<8x64xf32>
    %16 = tpu.matmul %14, %15, %cst_14 {dimension_numbers = #tpu.dot_dimension_numbers<[1], [0], [0], [1], [0, 0, 1, 1], [], []>} : vector<8x32xf32>, vector<32x64xf32>, vector<8x64xf32> -> vector<8x64xf32>
    %c0_15 = arith.constant 0 : index
    %c0_16 = arith.constant 0 : index
    %17 = vector.load %arg7[%c0_15, %c0_16] : memref<1x64xf32, #tpu.memory_space<vmem>>, vector<1x64xf32>
    %18 = vector.broadcast %17 : vector<1x64xf32> to vector<8x64xf32>
    %19 = arith.addf %16, %18 : vector<8x64xf32>
    %20 = math.tanh %19 : vector<8x64xf32>
    %21 = tpu.concatenate %19, %20 in 1 : vector<8x64xf32>, vector<8x64xf32> -> vector<8x128xf32>
    %c0_17 = arith.constant 0 : index
    %c0_18 = arith.constant 0 : index
    %22 = vector.load %arg8[%c0_17, %c0_18] : memref<8x128xf32, #tpu.memory_space<vmem>>, vector<8x128xf32>
    tpu.vector_store %arg8[%c0_17, %c0_18], %21 {strides = array<i32>} : memref<8x128xf32, #tpu.memory_space<vmem>>, vector<8x128xf32>,
    return
  }
  func.func @transform_0(%arg0: i32) -> (i32, i32) {
    %c0_i32 = arith.constant 0 : i32
    %c0_i32_0 = arith.constant 0 : i32
    return %arg0, %c0_i32 : i32, i32
  }
  func.func @transform_1(%arg0: i32) -> (i32, i32) {
    %c0_i32 = arith.constant 0 : i32
    %c0_i32_0 = arith.constant 0 : i32
    %c0_i32_1 = arith.constant 0 : i32
    return %c0_i32, %c0_i32_0 : i32, i32
  }
  func.func @transform_2(%arg0: i32) -> (i32, i32) {
    %c0_i32 = arith.constant 0 : i32
    %c0_i32_0 = arith.constant 0 : i32
    %c0_i32_1 = arith.constant 0 : i32
    return %c0_i32, %c0_i32_0 : i32, i32
  }
  func.func @transform_3(%arg0: i32) -> (i32, i32) {
    %c0_i32 = arith.constant 0 : i32
    %c0_i32_0 = arith.constant 0 : i32
    %c0_i32_1 = arith.constant 0 : i32
    return %c0_i32, %c0_i32_0 : i32, i32
  }
  func.func @transform_4(%arg0: i32) -> (i32, i32) {
    %c0_i32 = arith.constant 0 : i32
    %c0_i32_0 = arith.constant 0 : i32
    %c0_i32_1 = arith.constant 0 : i32
    return %c0_i32, %c0_i32_0 : i32, i32
  }
  func.func @transform_5(%arg0: i32) -> (i32, i32) {
    %c0_i32 = arith.constant 0 : i32
    %c0_i32_0 = arith.constant 0 : i32
    %c0_i32_1 = arith.constant 0 : i32
    return %c0_i32, %c0_i32_0 : i32, i32
  }
  func.func @transform_6(%arg0: i32) -> (i32, i32) {
    %c0_i32 = arith.constant 0 : i32
    %c0_i32_0 = arith.constant 0 : i32
    %c0_i32_1 = arith.constant 0 : i32
    return %c0_i32, %c0_i32_0 : i32, i32
  }
  func.func @transform_7(%arg0: i32) -> (i32, i32) {
    %c0_i32 = arith.constant 0 : i32
    %c0_i32_0 = arith.constant 0 : i32
    return %arg0, %c0_i32 : i32, i32
  }
}

</mosaic_0001>

<bundles_post_ra>
// kernel: equivariant_normal_policy.1
= control target key start
LH: loop header
LB: loop body
LE: loop exit
PB: predicated region body
PF: predicated region fallthrough
CT: control target
= control target key end

     0   :  { %s738_s24 = smov 0   ;;  %s813_s0 = inlined_call_operand.vmem [shape: f32[16,32], index: 0, kind: input, shape index: {}]   ;;  %s814_s1 = inlined_call_operand.vmem [shape: f32[32,32], index: 1, kind: input, shape index: {}]   ;;  %s815_s2 = inlined_call_operand.vmem [shape: f32[1,32], index: 2, kind: input, shape index: {}]   ;;  %s816_s3 = inlined_call_operand.vmem [shape: f32[32,32], index: 3, kind: input, shape index: {}]   ;;  %s817_s4 = inlined_call_operand.vmem [shape: f32[1,32], index: 4, kind: input, shape index: {}]   ;;  %s818_s5 = inlined_call_operand.vmem [shape: f32[32,64], index: 5, kind: input, shape index: {}]   ;;  %s819_s6 = inlined_call_operand.vmem [shape: f32[1,64], index: 6, kind: input, shape index: {}]   ;;  %s820_s7 = inlined_call_operand.vmem [shape: f32[16,128], index: 7, kind: output, shape index: {}]  }
   0x1 LB: > { %s591_s25 = sadd.s32 4294967295, %s692_s24   ;;  %p595_p0 = scmp.ge.s32.totalorder %s692_s24, 1  ;;  %s692_s24 = sphi %s738_s24, %s17_s24  }
   0x2   : > { %p236_p1 = scmp.lt.s32.totalorder %s692_s24, 3 }
   0x4   : > { %p237_p2 = pnand %p595_p0, %p236_p1 }
   0x5   : > { %v275_v0 = vld [vmem:[%s814_s1] sm:$0xff] (!%p237_p2)  ;;  %v276_v1 = vld [vmem:[%s814_s1 + $0x8] sm:$0xff] (!%p237_p2)  ;;  %v277_v2 = vld [vmem:[%s814_s1 + $0x10] sm:$0xff] (!%p237_p2)  ;;  %v694_v3 = vmov (!%p237_p2), 0.0|0.0   ;;  %vm695_vm0 = vmmov (!%p237_p2), 0   ;;  %v696_v6 = vmov (!%p237_p2), 0.0  }
   0x6   : > { %240 = sbr.rel (%p237_p2) target bundleno = 791 (0x317), region = 48  ;;  %654 = vmatprep.subr.bf16.mxu0 (!%p237_p2), %v694_v3  ;;  %v655_v4 = vpack.c.bf16 (!%p237_p2), %v276_v1, %v275_v0  ;;  %v278_v5 = vld [vmem:[%s814_s1 + $0x18] sm:$0xff] (!%p237_p2)  ;;  %629 = vmatprep.mubr.msk.f32.mxu0 (!%p237_p2), %vm695_vm0, %v696_v6  ;;  %p266_p3 = scmp.lt.s32.totalorder (!%p237_p2), %s591_s25, 1  ;;  %v361_v7 = vld [vmem:[%s816_s3] sm:$0xff] (!%p237_p2)  ;;  %v362_v8 = vld [vmem:[%s816_s3 + $0x8] sm:$0xff] (!%p237_p2)  ;;  %vm286_vm1 = vcmask (!%p237_p2), 261120  }
   0x7   : > { %660 = vmatprep.subr.bf16.mxu1 (!%p237_p2), %v694_v3  ;;  %v661_v9 = vpack.c.bf16 (!%p237_p2), %v362_v8, %v361_v7  ;;  %640 = vmatprep.mubr.msk.f32.mxu1 (!%p237_p2), %vm695_vm0, %v696_v6  ;;  %v658_v10 = vpack.c.bf16 (!%p237_p2), %v278_v5, %v277_v2  ;;  %v363_v12 = vld [vmem:[%s816_s3 + $0x10] sm:$0xff] (!%p237_p2)  ;;  %v364_v13 = vld [vmem:[%s816_s3 + $0x18] sm:$0xff] (!%p237_p2)  ;;  %v446_v15 = vld [vmem:[%s818_s5] sm:$0xff] (!%p237_p2)  ;;  %s697_s17 = smov (!%p237_p2), 64   ;;  %vm535_vm2 = vcmask (!%p237_p2), 523264  }
   0x8   : > { %656 = vmatpush3.bf16.msra.mxu0 (!%p237_p2), %v655_v4  ;;  %v664_v14 = vpack.c.bf16 (!%p237_p2), %v364_v13, %v363_v12  ;;  %v447_v16 = vld [vmem:[%s818_s5 + $0x8] sm:$0xff] (!%p237_p2)  ;;  %v598_v18 = vld [vmem:[%s815_s2] ss:$0 sm:$0xff] (!%p237_p2)  ;;  %v448_v23 = vld [vmem:[%s818_s5 + $0x10] sm:$0xff] (!%p237_p2) }
   0x9   : > { %657 = vmatprep.subr.bf16.mxu0 (!%p237_p2), %v694_v3  ;;  %662 = vmatpush3.bf16.msra.mxu1 (!%p237_p2), %v661_v9  ;;  %v667_v17 = vpack.c.bf16 (!%p237_p2), %v447_v16, %v446_v15  ;;  %v449_v24 = vld [vmem:[%s818_s5 + $0x18] sm:$0xff] (!%p237_p2)  ;;  %v600_v26 = vld [vmem:[%s817_s4] ss:$0 sm:$0xff] (!%p237_p2) }
   0xa   : > { %663 = vmatprep.subr.bf16.mxu1 (!%p237_p2), %v694_v3  ;;  %v670_v25 = vpack.c.bf16 (!%p237_p2), %v449_v24, %v448_v23  ;;  %v602_v31 = vld [vmem:[%s819_s6] ss:$0 sm:$0xff] (!%p237_p2) }
   0xc   : > { %659 = vmatpush3.bf16.msra.mxu0 (!%p237_p2), %v658_v10 }
   0xd   : > { %s822_s25 = smov (!%p266_p3, %s591_s25), 1  ;;  %666 = vmatprep.subr.bf16.mxu0 %v694_v3  ;;  %665 = vmatpush3.bf16.msra.mxu1 %v664_v14 }
   0xe   : > { %s596_s15 = sshll.u32 %s822_s25, 3 }
   0xf   : > { %s269_s18 = scalar_lea.vmem %s813_s0, %s596_s15  ;;  %s273_s20 = scalar_lea.vmem %s820_s7, %s596_s15 }
  0x10   : > { %v274_v11 = vld [vmem:[%s269_s18] sm:$0xff] }
  0x11   : > { %630 = vmatmul.mubr.msk.f32.vlgmr.msra.gmra.mrb[0].mxu0 %vm286_vm1, %v274_v11 }
  0x12   : > { %651 = vmatprep.mubr.msk.f32.mxu0 %vm695_vm0, %v696_v6  ;;  %668 = vmatpush3.bf16.msra.mxu0 %v667_v17 }
  0x13   : > { %669 = vmatprep.subr.bf16.mxu0 %v694_v3 }
  0x16   : > { %671 = vmatpush3.bf16.msra.mxu0 %v670_v25 }
  0xe4   : > { %v356_v19 = vpop.f32.mrb[0].mxu0 }
  0xe5   : > { %v357_v20 = vadd.f32 %v598_v18, %v356_v19  ;;  %v631_v21 = vpop.f32.mrb[1].mxu0 }
  0xe7   : > { %v360_v22 = vmax.f32 %v357_v20, 0.0 }
  0xe9   : > { %641 = vmatmul.mubr.msk.f32.vlgmr.msra.gmra.mrb[0].mxu1 %vm286_vm1, %v360_v22 }
 0x1bc   : > { %v441_v27 = vpop.f32.mrb[0].mxu1 }
 0x1bd   : > { %v442_v28 = vadd.f32 %v600_v26, %v441_v27  ;;  %v642_v29 = vpop.f32.mrb[1].mxu1 }
 0x1bf   : > { %v445_v30 = vmax.f32 %v442_v28, 0.0 }
 0x1c1   : > { %652 = vmatmul.mubr.msk.f32.vlgmr.msra.gmra.mrb[2].mxu0 %vm286_vm1, %v445_v30 }
 0x294   : > { %v526_v32 = vpop.f32.mrb[2].mxu0 }
 0x295   : > { %v527_v33 = vadd.f32 %v602_v31, %v526_v32  ;;  %v653_v34 = vpop.f32.mrb[3].mxu0 }
 0x297   : > { %684 = vtanh.f32 %v527_v33 }
 0x2a1   : > { %v685_v35 = vpop.eup %684 }
 0x2a2   : > { %532 = vrot.lane.b32.xlu0 %v685_v35, %s697_s17 }
 0x314   : > { %v533_v36 = vpop.permute.xlu0 %532 }
 0x315   : > { %v536_v37 = vsel %vm535_vm2, %v527_v33, %v533_v36 }
 0x316   : > { %537 = vst [vmem:[%s273_s20] sm:$0xff] %v536_v37 }
 0x317 PF: > { %s17_s24 = sadd.s32 1, %s692_s24  }
 0x318   : > { %p14_p4 = scmp.ge.s32.totalorder %s17_s24, 4  }
 0x31a   :  { %16 = sbr.rel (!%p14_p4) target bundleno = 1 (0x1), region = 78 }

</bundles_post_ra>
